<compile_context>
chip_gen: v6e
topology: v6e:2x2x1
jax: 0.10.0
libtpu: 0.0.40
codegen_flags: <defaults>
</compile_context>

<pallas_src>
import math
from functools import partial

import jax
import jax.numpy as jnp
from jax import lax
from jax.experimental import pallas as pl
from jax.experimental.pallas import tpu as pltpu


def _round_up(x, m):
    return ((x + m - 1) // m) * m


def gcn_kernel(text_ref, adj_ref, w_ref, b_ref, out_ref, acc_ref, *, fout):
    """One grid step: batch-block i (parallel axis), adj-column tile k (arbitrary).

    text_ref: (BB, TK, Fin) f32     adj_ref: (BB, Np, TK) bf16
    w_ref:    (Fin, Fp)     f32     b_ref:   (1, Fp)      f32
    out_ref:  (BB, Np, Fp)          acc_ref: (BB, Np, Fp) f32 scratch
    Lane `fout` of the accumulator carries rowsum(adj) (ones-column trick).
    """
    k = pl.program_id(1)

    @pl.when(k == 0)
    def _():
        acc_ref[...] = jnp.zeros_like(acc_ref)

    bb, tk, fin = text_ref.shape
    fp = w_ref.shape[1]

    # Dense projection of this column-tile's node rows: batch folded into M so one
    # (BB*TK, Fin) @ (Fin, Fp) matmul fills the MXU.
    hidden = jnp.dot(text_ref[...].reshape(bb * tk, fin), w_ref[...],
                     preferred_element_type=jnp.float32)            # (BB*TK, Fp) f32

    # Ones-column trick: overwrite the zero-padded lane `fout` with 1.0 so the
    # aggregation matmul below also produces rowsum(adj tile) in that lane with
    # exact f32 accumulation -- no XLU N^2 reduce, no f32 copy of adj.
    col = lax.broadcasted_iota(jnp.int32, hidden.shape, 1)
    hidden = jnp.where(col == fout, 1.0, hidden)

    # Neighborhood aggregation on the native bf16 MXU path, f32 accumulation.
    # (0/1 adjacency is exact in bf16; hidden rounds to bf16, ~1e-3 rel. error.)
    hidden = hidden.reshape(bb, tk, fp).astype(jnp.bfloat16)
    acc_ref[...] += jnp.einsum('bij,bjf->bif', adj_ref[...], hidden,
                               preferred_element_type=jnp.float32)  # (BB, Np, Fp)

    @pl.when(k == pl.num_programs(1) - 1)
    def _():
        acc = acc_ref[...]
        demon = acc[..., fout:fout + 1] + 1.0            # rowsum(adj) + 1   (>= 1)
        inv = pl.reciprocal(demon, approx=True)          # EUP slot, not VALU divide
        out = jnp.maximum(acc * inv, 0.0) + b_ref[...]   # bias added AFTER relu
        out_ref[...] = out.astype(out_ref.dtype)


def gcn_forward(text, adj, weight, bias, *, _force_column_tile=None):
    """Pallas forward of GCNlayer: relu((adj @ (text @ W)) / (rowsum(adj)+1)) + b."""
    B, N, Fin = text.shape
    Fout = weight.shape[1]
    out_dtype = text.dtype

    # Lane-dense feature axis with at least one spare lane for the fused row-sum.
    Fp = _round_up(Fout + 1, 128)

    # --- per-generation VMEM budget -----------------------------------------
    try:
        vmem_cap = int(pltpu.get_tpu_info().vmem_capacity_bytes)
    except Exception:
        vmem_cap = 64 * 1024 * 1024
    vmem_limit = max(32 * 1024 * 1024,
                     min(vmem_cap * 3 // 4, 100 * 1024 * 1024))
    budget = int(vmem_limit * 0.85)          # headroom for compiler scratch

    def vmem_bytes(bb, np_, tk):
        adj_b = 2 * bb * np_ * tk * 2        # bf16 adj, double-buffered
        text_b = 2 * bb * tk * Fin * 4       # f32 text, double-buffered
        out_b = 2 * bb * np_ * Fp * 4        # f32 out, double-buffered
        acc_b = bb * np_ * Fp * 4            # accumulator scratch
        hid_b = bb * tk * Fp * (4 + 2)       # f32 hidden + bf16 copy
        tmp_b = bb * np_ * Fp * 4            # einsum result before +=
        wb_b = 2 * (Fin * Fp * 4 + Fp * 4)   # resident weight + bias
        return adj_b + text_b + out_b + acc_b + hid_b + tmp_b + wb_b

    # --- node padding Np and adjacency-column tile TK ------------------------
    if _force_column_tile is not None:       # test-only knob for the tiled path
        TK = int(_force_column_tile)
        assert TK % 128 == 0
        Np = _round_up(N, TK)
    else:
        Np = _round_up(N, 8)                 # sublane-aligned -> no reshape relayout
        if vmem_bytes(1, Np, Np) <= budget:
            TK = Np                          # single pass over adj columns
        else:
            Np = _round_up(N, 128)
            m = Np // 128
            TK = 128
            for d in range(m, 0, -1):        # largest lane-aligned divisor that fits
                if m % d == 0 and vmem_bytes(1, Np, d * 128) <= budget:
                    TK = d * 128
                    break

    # --- batches per step: fill the VMEM budget, keep >= 2 grid steps (v7x TCs) --
    BB = 1
    while BB < B and BB < 1024 and vmem_bytes(BB + 1, Np, TK) <= budget:
        BB += 1
    if B >= 2:
        BB = min(BB, max(1, B // 2))
    Bp = _round_up(B, BB)

    # --- pad inputs (zeros are semantically inert; padding sliced off at the end) --
    if Bp != B or Np != N:
        text = jnp.pad(text, ((0, Bp - B), (0, Np - N), (0, 0)))
        adj = jnp.pad(adj, ((0, Bp - B), (0, Np - N), (0, Np - N)))
    adj_bf16 = adj.astype(jnp.bfloat16)      # exact for 0/1 adjacency
    w_p = jnp.zeros((Fin, Fp), jnp.float32).at[:, :Fout].set(weight.astype(jnp.float32))
    b_p = jnp.zeros((1, Fp), jnp.float32).at[0, :Fout].set(bias.astype(jnp.float32))

    kernel = partial(gcn_kernel, fout=Fout)
    out = pl.pallas_call(
        kernel,
        out_shape=jax.ShapeDtypeStruct((Bp, Np, Fp), out_dtype),
        grid_spec=pltpu.PrefetchScalarGridSpec(
            num_scalar_prefetch=0,
            grid=(Bp // BB, Np // TK),
            in_specs=[
                pl.BlockSpec((BB, TK, Fin), lambda i, k: (i, k, 0)),   # text rows tile
                pl.BlockSpec((BB, Np, TK), lambda i, k: (i, 0, k)),    # adj column tile
                pl.BlockSpec((Fin, Fp), lambda i, k: (0, 0)),          # resident weight
                pl.BlockSpec((1, Fp), lambda i, k: (0, 0)),            # resident bias
            ],
            out_specs=pl.BlockSpec((BB, Np, Fp), lambda i, k: (i, 0, 0)),
            scratch_shapes=[pltpu.VMEM((BB, Np, Fp), jnp.float32)],
        ),
        compiler_params=pltpu.CompilerParams(
            dimension_semantics=("parallel", "arbitrary"),
            vmem_limit_bytes=vmem_limit,
        ),
    )(text, adj_bf16, w_p, b_p)

    return out[:B, :N, :Fout]


def reference_gcn(text, adj, weight, bias):
    hidden = jnp.matmul(text, weight)
    demon = jnp.sum(adj, axis=2, keepdims=True) + 1.0
    out = jax.nn.relu(jnp.matmul(adj, hidden) / demon)
    return out + bias


if __name__ == "__main__":
    key = jax.random.PRNGKey(0)
    k_text, k_adj, k_w, k_b = jax.random.split(key, 4)

    # Small shapes: batch=2, nodes(seq)=8, gcn_input=16, gcn_hidden_dim=32
    B, N, Fin, Fout = 2, 8, 16, 32

    text = jax.random.normal(k_text, (B, N, Fin), dtype=jnp.float32)
    adj = (jax.random.uniform(k_adj, (B, N, N)) > 0.5).astype(jnp.float32)

    # Deterministic parameter init mimicking reset_parameters():
    # uniform(-stdv, stdv) with stdv = 1/sqrt(out_features)
    stdv = 1.0 / math.sqrt(Fout)
    weight = jax.random.uniform(k_w, (Fin, Fout), minval=-stdv, maxval=stdv,
                                dtype=jnp.float32)
    bias = jax.random.uniform(k_b, (Fout,), minval=-stdv, maxval=stdv,
                              dtype=jnp.float32)

    out = jax.block_until_ready(gcn_forward(text, adj, weight, bias))
    ref = reference_gcn(text, adj, weight, bias)
    assert out.shape == (B, N, Fout)
    # bf16 hidden (~1e-3 rel) + approx reciprocal (~1e-4 rel); rest exact f32.
    assert jnp.allclose(out, ref, atol=1e-2, rtol=1e-2), "mismatch vs reference (single pass)"

    # Also exercise the K-tiled accumulator path (forced small adjacency-column tile).
    N2 = 256
    k2_text, k2_adj = jax.random.split(jax.random.PRNGKey(1), 2)
    text2 = jax.random.normal(k2_text, (B, N2, Fin), dtype=jnp.float32)
    adj2 = (jax.random.uniform(k2_adj, (B, N2, N2)) > 0.5).astype(jnp.float32)
    out2 = jax.block_until_ready(
        gcn_forward(text2, adj2, weight, bias, _force_column_tile=128))
    ref2 = reference_gcn(text2, adj2, weight, bias)
    assert out2.shape == (B, N2, Fout)
    assert jnp.allclose(out2, ref2, atol=1e-2, rtol=1e-2), "mismatch vs reference (tiled path)"

    print("KERNEL_OK")
</pallas_src>

<mosaic_0001>
module attributes {stable_mosaic.version = 11 : i64} {
  func.func @gcn_kernel(%arg0: i32, %arg1: i32, %arg2: memref<1x8x16xf32, #tpu.memory_space<vmem>>, %arg3: memref<1x8x8xbf16, #tpu.memory_space<vmem>>, %arg4: memref<16x128xf32, #tpu.memory_space<vmem>>, %arg5: memref<1x128xf32, #tpu.memory_space<vmem>>, %arg6: memref<1x8x128xf32, #tpu.memory_space<vmem>>, %arg7: memref<1x8x128xf32, #tpu.memory_space<vmem>>) attributes {dimension_semantics = [#tpu.dimension_semantics<parallel>, #tpu.dimension_semantics<arbitrary>], iteration_bounds = array<i64: 2, 1>, scalar_prefetch = 0 : i64, scratch_operands = 1 : i64, tpu.core_type = #tpu.core_type<tc>, window_params = [{transform_indices = @transform_0, window_bounds = array<i64: 1, 8, 16>}, {transform_indices = @transform_1, window_bounds = array<i64: 1, 8, 8>}, {pipeline_mode = #tpu.pipeline_mode<synchronous>, transform_indices = @transform_2, window_bounds = array<i64: 16, 128>}, {pipeline_mode = #tpu.pipeline_mode<synchronous>, transform_indices = @transform_3, window_bounds = array<i64: 1, 128>}, {transform_indices = @transform_4, window_bounds = array<i64: 1, 8, 128>}]} {
    %c0_i32 = arith.constant 0 : i32
    %0 = arith.cmpi eq, %arg1, %c0_i32 : i32
    %1 = arith.extui %0 : i1 to i32
    %c0_i32_0 = arith.constant 0 : i32
    %2 = arith.cmpi ne, %1, %c0_i32_0 : i32
    scf.if %2 {
      %cst_18 = arith.constant 0.000000e+00 : f32
      %22 = vector.broadcast %cst_18 : f32 to vector<1x8x128xf32>
      %c0_19 = arith.constant 0 : index
      %c0_20 = arith.constant 0 : index
      %c0_21 = arith.constant 0 : index
      %23 = vector.load %arg7[%c0_19, %c0_20, %c0_21] : memref<1x8x128xf32, #tpu.memory_space<vmem>>, vector<1x8x128xf32>
      tpu.vector_store %arg7[%c0_19, %c0_20, %c0_21], %22 {strides = array<i32>} : memref<1x8x128xf32, #tpu.memory_space<vmem>>, vector<1x8x128xf32>,
    } else {
    }
    %c0 = arith.constant 0 : index
    %c0_1 = arith.constant 0 : index
    %c0_2 = arith.constant 0 : index
    %3 = vector.load %arg2[%c0, %c0_1, %c0_2] : memref<1x8x16xf32, #tpu.memory_space<vmem>>, vector<1x8x16xf32>
    %4 = vector.shape_cast %3 : vector<1x8x16xf32> to vector<8x16xf32>
    %c0_3 = arith.constant 0 : index
    %c0_4 = arith.constant 0 : index
    %5 = vector.load %arg4[%c0_3, %c0_4] : memref<16x128xf32, #tpu.memory_space<vmem>>, vector<16x128xf32>
    %cst = arith.constant dense<0.000000e+00> : vector<8x128xf32>
    %6 = tpu.matmul %4, %5, %cst {dimension_numbers = #tpu.dot_dimension_numbers<[1], [0], [0], [1], [0, 0, 1, 1], [], []>} : vector<8x16xf32>, vector<16x128xf32>, vector<8x128xf32> -> vector<8x128xf32>
    %7 = tpu.iota {dimensions = array<i32: 1>} : vector<8x128xi32>
    %c32_i32 = arith.constant 32 : i32
    %8 = vector.broadcast %c32_i32 : i32 to vector<8x128xi32>
    %9 = arith.cmpi eq, %7, %8 : vector<8x128xi32>
    %cst_5 = arith.constant 1.000000e+00 : f32
    %10 = vector.broadcast %cst_5 : f32 to vector<8x128xf32>
    %11 = arith.select %9, %10, %6 : vector<8x128xi1>, vector<8x128xf32>
    %12 = vector.shape_cast %11 : vector<8x128xf32> to vector<1x8x128xf32>
    %13 = arith.truncf %12 : vector<1x8x128xf32> to vector<1x8x128xbf16>
    %c0_6 = arith.constant 0 : index
    %c0_7 = arith.constant 0 : index
    %c0_8 = arith.constant 0 : index
    %14 = vector.load %arg7[%c0_6, %c0_7, %c0_8] : memref<1x8x128xf32, #tpu.memory_space<vmem>>, vector<1x8x128xf32>
    %c0_9 = arith.constant 0 : index
    %c0_10 = arith.constant 0 : index
    %c0_11 = arith.constant 0 : index
    %15 = vector.load %arg3[%c0_9, %c0_10, %c0_11] : memref<1x8x8xbf16, #tpu.memory_space<vmem>>, vector<1x8x8xbf16>
    "tpu.trace_start"() <{level = 10 : i32, message = "bij,bjf->bif"}> : () -> ()
    %cst_12 = arith.constant dense<0.000000e+00> : vector<1x8x128xf32>
    %16 = tpu.matmul %15, %13, %cst_12 {dimension_numbers = #tpu.dot_dimension_numbers<[2], [1], [1], [2], [0, 0, 0, 1, 1, 2], [0], [0]>} : vector<1x8x8xbf16>, vector<1x8x128xbf16>, vector<1x8x128xf32> -> vector<1x8x128xf32>
    "tpu.trace_stop"() : () -> ()
    %17 = arith.addf %14, %16 : vector<1x8x128xf32>
    %c0_13 = arith.constant 0 : index
    %c0_14 = arith.constant 0 : index
    %c0_15 = arith.constant 0 : index
    %18 = vector.load %arg7[%c0_13, %c0_14, %c0_15] : memref<1x8x128xf32, #tpu.memory_space<vmem>>, vector<1x8x128xf32>
    tpu.vector_store %arg7[%c0_13, %c0_14, %c0_15], %17 {strides = array<i32>} : memref<1x8x128xf32, #tpu.memory_space<vmem>>, vector<1x8x128xf32>,
    %c0_i32_16 = arith.constant 0 : i32
    %19 = arith.cmpi eq, %arg1, %c0_i32_16 : i32
    %20 = arith.extui %19 : i1 to i32
    %c0_i32_17 = arith.constant 0 : i32
    %21 = arith.cmpi ne, %20, %c0_i32_17 : i32
    scf.if %21 {
      %c0_18 = arith.constant 0 : index
      %c0_19 = arith.constant 0 : index
      %c0_20 = arith.constant 0 : index
      %22 = vector.load %arg7[%c0_18, %c0_19, %c0_20] : memref<1x8x128xf32, #tpu.memory_space<vmem>>, vector<1x8x128xf32>
      %23 = vector.extract_strided_slice %22 {offsets = [0, 0, 32], sizes = [1, 8, 1], strides = [1, 1, 1]} : vector<1x8x128xf32> to vector<1x8x1xf32>
      %cst_21 = arith.constant 1.000000e+00 : f32
      %24 = vector.broadcast %cst_21 : f32 to vector<1x8x1xf32>
      %25 = arith.addf %23, %24 : vector<1x8x1xf32>
      %26 = tpu.reciprocal %25 {approx = true} : vector<1x8x1xf32> -> vector<1x8x1xf32>
      %27 = vector.broadcast %26 : vector<1x8x1xf32> to vector<1x8x128xf32>
      %28 = arith.mulf %22, %27 : vector<1x8x128xf32>
      %cst_22 = arith.constant 0.000000e+00 : f32
      %29 = vector.broadcast %cst_22 : f32 to vector<1x8x128xf32>
      %30 = arith.maximumf %28, %29 : vector<1x8x128xf32>
      %c0_23 = arith.constant 0 : index
      %c0_24 = arith.constant 0 : index
      %31 = vector.load %arg5[%c0_23, %c0_24] : memref<1x128xf32, #tpu.memory_space<vmem>>, vector<1x128xf32>
      %32 = vector.shape_cast %31 : vector<1x128xf32> to vector<1x1x128xf32>
      %33 = vector.broadcast %32 : vector<1x1x128xf32> to vector<1x8x128xf32>
      %34 = arith.addf %30, %33 : vector<1x8x128xf32>
      %c0_25 = arith.constant 0 : index
      %c0_26 = arith.constant 0 : index
      %c0_27 = arith.constant 0 : index
      %35 = vector.load %arg6[%c0_25, %c0_26, %c0_27] : memref<1x8x128xf32, #tpu.memory_space<vmem>>, vector<1x8x128xf32>
      tpu.vector_store %arg6[%c0_25, %c0_26, %c0_27], %34 {strides = array<i32>} : memref<1x8x128xf32, #tpu.memory_space<vmem>>, vector<1x8x128xf32>,
    } else {
    }
    return
  }
  func.func @transform_0(%arg0: i32, %arg1: i32) -> (i32, i32, i32) {
    %c0_i32 = arith.constant 0 : i32
    %c0_i32_0 = arith.constant 0 : i32
    return %arg0, %arg1, %c0_i32 : i32, i32, i32
  }
  func.func @transform_1(%arg0: i32, %arg1: i32) -> (i32, i32, i32) {
    %c0_i32 = arith.constant 0 : i32
    %c0_i32_0 = arith.constant 0 : i32
    return %arg0, %c0_i32, %arg1 : i32, i32, i32
  }
  func.func @transform_2(%arg0: i32, %arg1: i32) -> (i32, i32) {
    %c0_i32 = arith.constant 0 : i32
    %c0_i32_0 = arith.constant 0 : i32
    %c0_i32_1 = arith.constant 0 : i32
    return %c0_i32, %c0_i32_0 : i32, i32
  }
  func.func @transform_3(%arg0: i32, %arg1: i32) -> (i32, i32) {
    %c0_i32 = arith.constant 0 : i32
    %c0_i32_0 = arith.constant 0 : i32
    %c0_i32_1 = arith.constant 0 : i32
    return %c0_i32, %c0_i32_0 : i32, i32
  }
  func.func @transform_4(%arg0: i32, %arg1: i32) -> (i32, i32, i32) {
    %c0_i32 = arith.constant 0 : i32
    %c0_i32_0 = arith.constant 0 : i32
    %c0_i32_1 = arith.constant 0 : i32
    return %arg0, %c0_i32, %c0_i32_0 : i32, i32, i32
  }
}

</mosaic_0001>

<bundles_post_ra>
// kernel: tpu_custom_call.1
= control target key start
LH: loop header
LB: loop body
LE: loop exit
PB: predicated region body
PF: predicated region fallthrough
CT: control target
= control target key end

     0   :  { %s1095_s0 = inlined_call_operand.hbm [shape: f32[2,8,16], index: 0, kind: input, shape index: {}]   ;;  %s1096_s1 = inlined_call_operand.hbm [shape: bf16[2,8,8], index: 1, kind: input, shape index: {}]   ;;  %s1097_s2 = inlined_call_operand.hbm [shape: f32[16,128], index: 2, kind: input, shape index: {}]   ;;  %s1098_s3 = inlined_call_operand.vmem [shape: f32[1,128], index: 3, kind: input, shape index: {}]   ;;  %s1099_s4 = inlined_call_operand.hbm [shape: f32[2,8,128], index: 4, kind: output, shape index: {}]  }
   0x1   :  { %1101 = sst [smem:[#allocation16_spill]] %s1095_s0 }
   0x2   :  { %1102 = sst [smem:[#allocation17_spill]] %s1097_s2 }
   0x3   :  { %9 = vsyncpa [#allocation4], 0 }
   0x4   :  { %11 = vsyncpa [#allocation4 + $0x1], 0 }
   0x5   :  { %12 = vsyncpa [#allocation7], 0 }
   0x6   :  { %14 = vsyncpa [#allocation7 + $0x1], 0 }
   0x7   :  { %15 = vsyncpa [#allocation5], 0 }
   0x8   :  { %17 = vsyncpa [#allocation5 + $0x1], 0  ;;  %s901_s15 = smov 0   ;;  %s903_s16 = smov 0  }
   0x9   :  { %s905_s17 = smov 0   ;;  %s907_s18 = smov 0  }
   0xa   :  { %s909_s19 = smov 0   ;;  %s911_s20 = smov 0  }
   0xb LB: > { %s932_s21 = sadd.s32 4294967295, %s865_s20   ;;  %s571_s22 = sadd.s32 4294967294, %s865_s20   ;;  %s865_s20 = sphi %s911_s20, %s23_s20   ;;  %s861_s19 = sphi %s909_s19, %s1122_s19   ;;  %s857_s18 = sphi %s907_s18, %s1121_s18   ;;  %s853_s17 = sphi %s905_s17, %s1120_s17   ;;  %s849_s16 = sphi %s903_s16, %s1119_s16   ;;  %s845_s15 = sphi %s901_s15, %s1118_s15  }
   0xc   : > { %p57_p0 = scmp.ne.s32.totalorder %s849_s16, %s845_s15  ;;  %p58_p1 = scmp.eq.s32.totalorder %s932_s21, 0 }
   0xd   : > { %p157_p3 = scmp.eq.s32.totalorder %s571_s22, 1  ;;  %p572_p5 = scmp.ge.s32.totalorder %s865_s20, 1 }
   0xe   : > { %p941_p4 = por %p58_p1, %p57_p0  ;;  %p164_p7 = scmp.lt.s32.totalorder %s865_s20, 3 }
   0xf   : > { %p946_p6 = por %p157_p3, %p57_p0  ;;  %s867_s26 = smov [#allocation8]  }
  0x10   : > { %p951_p8 = pnand %p572_p5, %p164_p7  ;;  %s176_s27 = sshll.u32 %s867_s26, 4  ;;  %s177_s27 = int_to_ptr.vmem [resolvable:$true] %s176_s27 }
  0x11   : > { %s1104_s24 = scalar_select %p946_p6, 1, 0 }
  0x12   : > { %p619_p9 = pneg %p951_p8  ;;  %p574_p10 = scmp.ge.s32.totalorder %s865_s20, 2 }
  0x13   : > { %s35_s29 = sadd.s32 1, %s861_s19  ;;  %s706_s30 = scalar_lea.vmem %s177_s27, 256 }
  0x14   : > { %p960_p11 = pnand %p619_p9, %p58_p1  ;;  %p707_p13 = scmp.ne.s32.totalorder %s177_s27, %s706_s30 }
  0x15   : > { %p714_p5 = scmp.lt.s32.totalorder %s177_s27, %s177_s27  ;;  %p715_p7 = scmp.lt.s32.totalorder %s706_s30, %s706_s30 }
  0x16   : > { %p697_p12 = pneg %p960_p11 }
  0x17   : > { %p716_p2 = por %p715_p7, %p714_p5 }
  0x18   : > { %p709_p0 = pnand %p707_p13, %p697_p12 }
  0x1a   : > { %p710_p3 = pneg %p709_p0 }
  0x1c   : > { %p717_p6 = pnand %p716_p2, %p710_p3 }
  0x1e   : > { %720 = shalt.err (!%p717_p6)
}
  0x1f   : > { %s868_s5 = smov 128   ;;  %s869_s6 = smov 8  }
  0x20   : > { %s1107_s2 = sld [smem:[#allocation17_spill]]  ;;  %p37_p2 = scmp.ge.s32.totalorder %s35_s29, 2 }
  0x21   : > { %s44_s9 = sadd.s32 1, %s853_s17  ;;  %p51_p6 = scmp.ne.s32.totalorder %s853_s17, %s849_s16 }
  0x22   : > { %p52_p9 = scmp.eq.s32.totalorder %s865_s20, 0  ;;  %s1124_s29 = smov (%p37_p2, %s35_s29), 0 }
  0x23   : > { %1108 = sst [smem:[#allocation14_spill]] %s1124_s29  ;;  %p1110_p13 = scmp.eq.s32.totalorder %s932_s21, 1 }
  0x24   : > { %p978_p12 = por %p52_p9, %p51_p6  ;;  %s39_s12 = ssub.s32 %s861_s19, %s1124_s29 }
  0x25   : > { %p984_p0 = por %p1110_p13, %p51_p6  ;;  %p42_p3 = scmp.eq.s32.totalorder %s39_s12, 0 }
  0x26   : > { %622 = dma.hbm_to_vmem [thread:$0]  (!%p960_p11), %s1107_s2, 256, %s177_s27, [#allocation7], %s868_s5, %s868_s5, %s869_s6  }
  0x27   : > { %p635_p11 = scmp.lt.s32.totalorder %s865_s20, 2  ;;  %s992_s13 = sand.u32 1, %s853_s17  }
  0x28   : > { %s575_s14 = sshll.u32 %s992_s13, 3  ;;  %s576_s26 = sshll.u32 %s861_s19, 7 }
  0x29   : > { %s996_s22 = scalar_select %p42_p3, %s853_s17, %s44_s9  }
  0x2a   : > { %s1113_s0 = sld [smem:[#allocation16_spill]]  ;;  %s197_s5 = scalar_lea.vmem [#allocation3], %s575_s14 }
  0x2b   : > { %1112 = sst [smem:[#allocation15_spill]] %s996_s22  ;;  %s205_s6 = sshll.u32 %s197_s5, 4  ;;  %s206_s6 = int_to_ptr.vmem [resolvable:$true] %s205_s6 }
  0x2c   : > { %p1004_p5 = pnand %p635_p11, %p978_p12  ;;  %s212_s8 = sand.u32 1, %s865_s20  }
  0x2d   : > { %s577_s12 = sshll.u32 %s992_s13, 2  ;;  %s194_s2 = scalar_lea.sflag [#allocation4], %s992_s13 }
  0x2e   : > { %p723_p7 = pneg %p1004_p5  ;;  %s734_s9 = scalar_lea.vmem %s206_s6, 128 }
  0x2f   : > { %p735_p2 = scmp.ne.s32.totalorder %s206_s6, %s734_s9  ;;  %s870_s14 = smov [#allocation3]  }
  0x30   : > { %s203_s30 = scalar_lea.hbm %s1113_s0, %s576_s26  ;;  %s739_s26 = sshll.u32 %s870_s14, 4  ;;  %s740_s26 = int_to_ptr.vmem [resolvable:$false] %s739_s26 }
  0x31   : > { %p737_p6 = pnand %p735_p2, %p723_p7  ;;  %s741_s10 = scalar_lea.vmem %s740_s26, 256 }
  0x32   : > { %p742_p12 = scmp.lt.s32.totalorder %s206_s6, %s740_s26  ;;  %p743_p13 = scmp.lt.s32.totalorder %s741_s10, %s734_s9 }
  0x33   : > { %p738_p9 = pneg %p737_p6 }
  0x34   : > { %p744_p11 = por %p743_p13, %p742_p12 }
  0x36   : > { %p745_p3 = pnand %p744_p11, %p738_p9 }
  0x38   : > { %748 = shalt.err (!%p745_p3)
}
  0x39   : > { %626 = dma.hbm_to_vmem [thread:$0]  (!%p1004_p5), %s203_s30, 128, %s206_s6, %s194_s2  }
  0x3a   : > { %s578_s13 = sshll.u32 %s861_s19, 6  ;;  %s216_s0 = scalar_lea.vmem [#allocation6], %s577_s12 }
  0x3b   : > { %s222_s5 = scalar_lea.hbm %s1096_s1, %s578_s13  ;;  %s224_s29 = sshll.u32 %s216_s0, 4  ;;  %s225_s29 = int_to_ptr.vmem [resolvable:$true] %s224_s29 }
  0x3c   : > { %s213_s14 = scalar_lea.sflag [#allocation7], %s212_s8  ;;  %s762_s22 = scalar_lea.vmem %s225_s29, 64 }
  0x3d   : > { %p763_p2 = scmp.ne.s32.totalorder %s225_s29, %s762_s22  ;;  %s871_s9 = smov [#allocation6]  }
  0x3e   : > { %s767_s26 = sshll.u32 %s871_s9, 4  ;;  %s768_s26 = int_to_ptr.vmem [resolvable:$false] %s767_s26 }
  0x3f   : > { %p765_p6 = pnand %p763_p2, %p723_p7  ;;  %s769_s10 = scalar_lea.vmem %s768_s26, 128 }
  0x40   : > { %p770_p12 = scmp.lt.s32.totalorder %s225_s29, %s768_s26  ;;  %p771_p13 = scmp.lt.s32.totalorder %s769_s10, %s762_s22 }
  0x41   : > { %p766_p9 = pneg %p765_p6 }
  0x42   : > { %p772_p11 = por %p771_p13, %p770_p12 }
  0x44   : > { %p773_p3 = pnand %p772_p11, %p766_p9 }
  0x46   : > { %776 = shalt.err (!%p773_p3)
}
  0x47   : > { %629 = dma.hbm_to_vmem [thread:$0]  (!%p1004_p5), %s222_s5, 64, %s225_s29, %s213_s14  }
  0x48   : > { %233 = sbr.rel (%p951_p8) target bundleno = 641 (0x281), region = 36  ;;  %s1030_s0 = sand.u32 (!%p951_p8), 1, %s849_s16  }
  0x49   : > { %s580_s2 = sshll.u32 (!%p951_p8), %s1030_s0, 3  ;;  %s236_s30 = scalar_lea.sflag (!%p951_p8), [#allocation4], %s1030_s0 }
  0x4a   : > { %s239_s22 = scalar_lea.vmem (!%p951_p8), [#allocation3], %s580_s2 }
  0x4d   : > { %828 = dma.done.wait (%p941_p4), %s236_s30, 128  }
  0x4e   : > { %830 = vsyncadd (%p941_p4), %s236_s30, 4294967168  ;;  %s244_s25 = sand.u32 1, %s932_s21   ;;  %s581_s29 = sshll.u32 %s1030_s0, 2 }
  0x4f   : > { %s245_s6 = scalar_lea.sflag [#allocation7], %s244_s25  ;;  %s248_s7 = scalar_lea.vmem [#allocation6], %s581_s29 }
  0x50   : > { %832 = dma.done.wait (%p941_p4), %s245_s6, 64  }
  0x51   : > { %834 = vsyncadd (%p941_p4), %s245_s6, 4294967232 }
  0x52   : > { %836 = dma.done.wait (%p58_p1), [#allocation7], 256  }
  0x53   : > { %838 = vsyncadd (%p58_p1), [#allocation7], 4294967040  ;;  %v872_v0 = vmov 0.0   ;;  %vm873_vm0 = vmmov 0   ;;  %v290_v1 = vld [vmem:[#allocation8 + $0x8] sm:$0xff]  ;;  %v289_v2 = vld [vmem:[#allocation8] sm:$0xff]  ;;  %v365_v4 = vlaneseq }
  0x54   : > { %596 = vmatprep.subr.mxu0 %v872_v0  ;;  %600 = vmatprep.mubr.msk.f32.mxu0 %vm873_vm0, %v872_v0  ;;  %v288_v3 = vld [vmem:[%s239_s22] sm:$0xff]  ;;  %vm291_vm1 = vcmask 130048   ;;  %vm376_vm3 = vcmask 1043456   ;;  %v371_v11 = vld [vmem:[%s248_s7] sm:$0xf]  ;;  %vm372_vm4 = vcmask 64512  }
  0x55   : > { %603 = vmatprep.subr.bf16.mxu1 %v872_v0  ;;  %605 = vmatprep.mubr.msk.bf16.mxu1 %vm873_vm0, %v872_v0  ;;  %v366_v5 = vand.u32 127, %v365_v4  ;;  %v874_v12 = vmov 32   ;;  %v586_v21 = vld [vmem:[%s1098_s3] ss:$0 sm:$0xff]  ;;  %s588_s8 = sshll.u32 %s857_s18, 7  ;;  %s281_s12 = scalar_lea.vmem [#allocation9], %s580_s2 }
  0x56   : > { %597 = vmatpush3.msra.mxu0 %v290_v1  ;;  %692 = vset.pattern.permute.xlu0 %v874_v12  ;;  %s458_s13 = sshll.u32 %s281_s12, 4  ;;  %s456_s5 = scalar_lea.hbm %s1099_s4, %s588_s8  ;;  %s459_s13 = int_to_ptr.vmem [resolvable:$true] %s458_s13 }
  0x57   : > { %598 = vmatprep.subr.mxu0 %v872_v0  ;;  %vm367_vm2 = vcmp.eq.s32.totalorder %v366_v5, 32  ;;  %s445_s14 = scalar_lea.sflag [#allocation5], %s1030_s0  ;;  %s777_s9 = scalar_lea.vmem %s459_s13, 128 }
  0x58   : > { %599 = vmatpush3.msra.mxu0 %v289_v2  ;;  %p778_p1 = scmp.ne.s32.totalorder %s459_s13, %s777_s9  ;;  %s875_s26 = smov [#allocation9]  }
  0x59   : > { %601 = vmatmul.mubr.msk.f32.vlgmr.msra.gmra.mxu0 %vm291_vm1, %v288_v3  ;;  %s781_s10 = sshll.u32 %s875_s26, 4  ;;  %s782_s10 = int_to_ptr.vmem [resolvable:$false] %s781_s10 }
  0x5a   : > { %p779_p4 = pnand %p778_p1, %p984_p0  ;;  %s783_s18 = scalar_lea.vmem %s782_s10, 256 }
  0x5b   : > { %p784_p5 = scmp.lt.s32.totalorder %s459_s13, %s782_s10  ;;  %p785_p7 = scmp.lt.s32.totalorder %s783_s18, %s777_s9 }
  0x5c   : > { %p780_p8 = pneg %p779_p4 }
  0x5d   : > { %p786_p2 = por %p785_p7, %p784_p5 }
  0x5f   : > { %p787_p6 = pnand %p786_p2, %p780_p8 }
 0x119   : > { %v361_v6 = vpop.f32.mrf.mxu0 }
 0x11a   : > { %v368_v7 = vsel %vm367_vm2, 1.0, %v361_v6 }
 0x11b   : > { %v369_v8 = vpack.c.bf16 %v368_v7, %v368_v7  ;;  %v602_v9 = vpop.f32.mrf.mxu0 }
 0x11d   : > { %v378_v10 = vsel %vm376_vm3, %v369_v8, 0 }
 0x11e   : > { %604 = vmatpush3.bf16.msra.mxu1 %v378_v10 }
 0x121   : > { %606 = vmatmul.mubr.msk.bf16.vlgmr.msra.gmra.mxu1 %vm372_vm4, %v371_v11 }
 0x1e1   : > { %v414_v13 = vpop.f32.mrf.mxu1 }
 0x1e2   : > { %v426_v14 = vadd.f32 1.0, %v414_v13 }
 0x1e3   : > { %v607_v15 = vpop.f32.mrf.mxu1 }
 0x1e4   : > { %693 = vrcp.f32 %v426_v14 }
 0x1e5   : > { %v417_v16 = vpop.f32.mrf.mxu1 }
 0x1e7   : > { %v608_v17 = vpop.f32.mrf.mxu1 }
 0x1f1   : > { %v694_v18 = vpop.eup %693 }
 0x1f2   : > { %430 = vperm.xlu0 %692, %v694_v18  }
 0x26d   : > { %v431_v19 = vpop.permute.xlu0 %430 }
 0x26e   : > { %v433_v20 = vmul.f32 %v431_v19, %v414_v13 }
 0x270   : > { %v434_v22 = vmax.f32 %v433_v20, 0.0 }
 0x272   : > { %v442_v23 = vadd.f32 %v586_v21, %v434_v22 }
 0x274   : > { %443 = vst [vmem:[%s281_s12] sm:$0xff] %v442_v23 }
 0x275   : > { %790 = shalt.err (!%p787_p6)
}
 0x276   : > { %s791_s2 = scalar_lea.hbm %s456_s5, 128  ;;  %s795_s22 = scalar_lea.hbm %s1099_s4, 256 }
 0x277   : > { %p792_p9 = scmp.ne.s32.totalorder %s456_s5, %s791_s2  ;;  %p796_p11 = scmp.lt.s32.totalorder %s456_s5, %s1099_s4 }
 0x278   : > { %p797_p3 = scmp.lt.s32.totalorder %s795_s22, %s791_s2 }
 0x279   : > { %p793_p12 = pnand %p792_p9, %p984_p0 }
 0x27a   : > { %p798_p1 = por %p797_p3, %p796_p11 }
 0x27b   : > { %p794_p13 = pneg %p793_p12 }
 0x27d   : > { %p799_p4 = pnand %p798_p1, %p794_p13 }
 0x27f   : > { %802 = shalt.err (!%p799_p4)
}
 0x280   : > { %617 = dma.vmem_to_hbm [thread:$0]  (%p984_p0), %s459_s13, 128, %s456_s5, %s445_s14  }
 0x281 PF: > { %s470_s6 = sand.u32 1, %s845_s15   ;;  %p1115_p8 = scmp.ne.s32.totalorder %s1104_s24, 0 }
 0x282   : > { %s471_s7 = scalar_lea.sflag [#allocation5], %s470_s6 }
 0x283   : > { %p631_p5 = pnand %p574_p10, %p1115_p8 }
 0x285   : > { %p632_p7 = pneg %p631_p5 }
 0x287   : > { %840 = dma.done.wait (%p632_p7), %s471_s7, 128  }
 0x288   : > { %842 = vsyncadd (%p632_p7), %s471_s7, 4294967168  ;;  %s23_s20 = sadd.s32 1, %s865_s20   ;;  %s1116_s21 = sld [smem:[#allocation15_spill]] }
 0x289   : > { %p20_p2 = scmp.ge.s32.totalorder %s23_s20, 4   ;;  %s1117_s11 = sld [smem:[#allocation14_spill]] }
 0x28a   : > { %s1118_s15 = smov %s849_s16  ;;  %s1119_s16 = smov %s853_s17 }
 0x28b   : > { %s1121_s18 = smov %s861_s19  ;;  %22 = sbr.rel (!%p20_p2) target bundleno = 11 (0xb), region = 106 }
 0x28e   : > { %s1120_s17 = smov %s1116_s21 }
 0x28f   : > { %s1122_s19 = smov %s1117_s11 }
 0x290   :  { %476 = vsyncpa [#allocation4], 1 }
 0x291   :  { %478 = vsyncpa [#allocation4 + $0x1], 1 }
 0x292   :  { %479 = vsyncpa [#allocation7], 1 }
 0x293   :  { %481 = vsyncpa [#allocation7 + $0x1], 1 }
 0x294   :  { %482 = vsyncpa [#allocation5], 1 }
 0x295   :  { %484 = vsyncpa [#allocation5 + $0x1], 1 }

</bundles_post_ra>
